<compile_context>
chip_gen: v7x
topology: tpu7x:2x2x1
jax: 0.10.0
libtpu: 0.0.40
codegen_flags: <defaults>
</compile_context>

<pallas_src>
import jax
import jax.numpy as jnp
from jax import lax
from jax.experimental import pallas as pl
from jax.experimental.pallas import tpu as pltpu


def _make_kernel(hw_total: int, hw_tile: int, need_mask: bool):
    inv_hw = 1.0 / float(hw_total)

    def kernel(x_ref, w1_ref, b1_ref, w12_ref, b12_ref, x2_ref, x1_ref, acc_ref):
        # x_ref:   (N, Cin, hw_tile)  lane-dense spatial tile
        # w1_ref:  (Cout, Cin)        raw conv weight (no wrapper transpose)
        # b1_ref:  (1, Cout)
        # w12_ref: (Cin, F)           fused conv->linear weight (w1^T @ w2^T)
        # b12_ref: (1, F)             fused bias (b1 @ w2^T + b2)
        # acc_ref: (N, Cin) f32       running spatial sums
        k = pl.program_id(0)

        @pl.when(k == 0)
        def _init():
            acc_ref[...] = jnp.zeros_like(acc_ref)

        x = x_ref[...]                                    # (N, Cin, T) f32
        if need_mask:
            # Zero out-of-range spatial columns of the (padded) boundary tile.
            col = k * hw_tile + lax.broadcasted_iota(jnp.int32, x.shape, 2)
            x = jnp.where(col < hw_total, x, 0.0)
        # Raw sums per tile; the 1/HW scale is applied once in the finalize.
        acc_ref[...] += jnp.sum(x, axis=-1)               # (N, Cin)

        @pl.when(k == pl.num_programs(0) - 1)
        def _finalize():
            m = acc_ref[...] * inv_hw                     # (N, Cin) spatial mean
            # x1 = m @ w1^T + b1  (contract m dim 1 with w1 dim 1, no transpose)
            x1 = lax.dot_general(
                m, w1_ref[...], (((1,), (1,)), ((), ())),
                preferred_element_type=jnp.float32) + b1_ref[...]
            x1_ref[...] = x1.astype(x1_ref.dtype)
            # x2 = m @ W12 + b12  (independent of x1: fused conv+linear weights)
            x2 = jnp.dot(m, w12_ref[...],
                         preferred_element_type=jnp.float32) + b12_ref[...]
            x2_ref[...] = x2.astype(x2_ref.dtype)

    return kernel


def _choose_hw_tile(n: int, c: int, hw: int, budget_bytes: int = 4 << 20) -> int:
    """Lane-dense spatial tile.

    Keeps (x tile bytes x 2 double buffers) well under the scoped-VMEM defaults
    of every TPU generation (v5e 16 MiB, v6e/v7x 32 MiB) while staying >= 512
    lanes where possible (~85% of HBM roofline per measured tiled-stream data).
    """
    per_col_bytes = max(n * c * 4 * 2, 1)          # f32, double buffered
    tile = (budget_bytes // per_col_bytes) // 128 * 128
    tile = int(max(128, min(tile, 2048)))
    if tile >= hw:
        return hw                                   # whole spatial extent, grid = 1
    return tile


def testpos_forward(x_nchw, w1, b1, w2, b2, *, hw_tile=None):
    """Pallas implementation of TestPos.forward. Returns (x2, x1).

    w1: (Cout, Cin) squeezed 1x1-conv weight, b1: (Cout,)
    w2: (F, Cout) linear weight,              b2: (F,)
    """
    N, C, H, W = x_nchw.shape
    HW = H * W
    cout, cin = w1.shape
    f_out = w2.shape[0]
    assert cin == C, "conv in_channels must match input channels"

    x = x_nchw.reshape(N, C, HW)                    # pure reshape (NCHW contiguous)

    # Tiny fused parameters (5x3-ish): computed once in the wrapper so the two
    # in-kernel matmuls are independent of each other.
    w12 = jnp.dot(w1.T, w2.T)                       # (Cin, F)
    b12 = (jnp.dot(b1, w2.T) + b2).reshape(1, f_out)
    b1_2d = b1.reshape(1, cout)

    if hw_tile is None:
        hw_tile = _choose_hw_tile(N, C, HW)
    hw_tile = int(min(hw_tile, HW))
    grid = (pl.cdiv(HW, hw_tile),)
    need_mask = (HW % hw_tile) != 0

    kernel = _make_kernel(HW, hw_tile, need_mask)

    cost = pl.CostEstimate(
        flops=N * C * HW + 2 * N * C * cout + 2 * N * C * f_out,
        transcendentals=0,
        bytes_accessed=4 * (N * C * HW + cout * cin + cout + cin * f_out + f_out
                            + N * cout + N * f_out),
    )

    out_shapes = (
        jax.ShapeDtypeStruct((N, f_out), jnp.float32),   # x2
        jax.ShapeDtypeStruct((N, cout), jnp.float32),    # x1
    )
    x2, x1 = pl.pallas_call(
        kernel,
        out_shape=out_shapes,
        grid=grid,
        in_specs=[
            pl.BlockSpec((N, C, hw_tile), lambda k: (0, 0, k)),   # streamed x
            pl.BlockSpec((cout, cin), lambda k: (0, 0)),          # resident weights
            pl.BlockSpec((1, cout), lambda k: (0, 0)),
            pl.BlockSpec((cin, f_out), lambda k: (0, 0)),
            pl.BlockSpec((1, f_out), lambda k: (0, 0)),
        ],
        out_specs=(
            pl.BlockSpec((N, f_out), lambda k: (0, 0)),
            pl.BlockSpec((N, cout), lambda k: (0, 0)),
        ),
        scratch_shapes=[pltpu.VMEM((N, C), jnp.float32)],
        compiler_params=pltpu.CompilerParams(
            dimension_semantics=("arbitrary",)),
        cost_estimate=cost,
    )(x, w1, b1_2d, w12, b12)
    return x2, x1


def reference_forward(x_nchw, w1, b1, w2, b2):
    """Pure-JAX reference matching PyTorch semantics (conv -> pool -> linear)."""
    N, C, H, W = x_nchw.shape
    xs = jnp.transpose(x_nchw, (0, 2, 3, 1)).reshape(N, H * W, C)
    y = jnp.einsum("nsc,oc->nso", xs, w1) + b1[None, None, :]
    x1 = jnp.mean(y, axis=1)
    x2 = x1 @ w2.T + b2[None, :]
    return x2, x1


if __name__ == "__main__":
    key = jax.random.PRNGKey(0)
    k_xa, k_xb, k_w1, k_b1, k_w2, k_b2 = jax.random.split(key, 6)

    # Module-implied parameter shapes: Conv2d(5, 5, 1) -> Linear(5, 3).
    C, F_OUT = 5, 3
    bound_c = 1.0 / (C ** 0.5)
    w1 = jax.random.uniform(k_w1, (C, C), jnp.float32, -bound_c, bound_c)  # (Cout, Cin)
    b1 = jax.random.uniform(k_b1, (C,), jnp.float32, -bound_c, bound_c)
    bound_l = 1.0 / (C ** 0.5)
    w2 = jax.random.uniform(k_w2, (F_OUT, C), jnp.float32, -bound_l, bound_l)
    b2 = jax.random.uniform(k_b2, (F_OUT,), jnp.float32, -bound_l, bound_l)

    # Case 1: HW = 256 with a 128-wide tile -> clean 2-step accumulation.
    Na, Ha, Wa = 2, 16, 16
    x_a = jax.random.normal(k_xa, (Na, C, Ha, Wa), dtype=jnp.float32)
    x2_a, x1_a = testpos_forward(x_a, w1, b1, w2, b2, hw_tile=128)
    jax.block_until_ready((x2_a, x1_a))
    x2_ra, x1_ra = reference_forward(x_a, w1, b1, w2, b2)
    assert x2_a.shape == (Na, F_OUT) and x1_a.shape == (Na, C)
    assert jnp.allclose(x1_a, x1_ra, atol=1e-5, rtol=1e-5)
    assert jnp.allclose(x2_a, x2_ra, atol=1e-5, rtol=1e-5)

    # Case 1b: same input through the auto-chosen tile (single full-extent block).
    x2_c, x1_c = testpos_forward(x_a, w1, b1, w2, b2)
    jax.block_until_ready((x2_c, x1_c))
    assert jnp.allclose(x1_c, x1_ra, atol=1e-5, rtol=1e-5)
    assert jnp.allclose(x2_c, x2_ra, atol=1e-5, rtol=1e-5)

    # Case 2: ragged spatial tail (HW = 144, tile = 128) exercises the lane mask.
    Nb, Hb, Wb = 3, 12, 12
    x_b = jax.random.normal(k_xb, (Nb, C, Hb, Wb), dtype=jnp.float32)
    x2_b, x1_b = testpos_forward(x_b, w1, b1, w2, b2, hw_tile=128)
    jax.block_until_ready((x2_b, x1_b))
    x2_rb, x1_rb = reference_forward(x_b, w1, b1, w2, b2)
    assert x2_b.shape == (Nb, F_OUT) and x1_b.shape == (Nb, C)
    assert jnp.allclose(x1_b, x1_rb, atol=1e-5, rtol=1e-5)
    assert jnp.allclose(x2_b, x2_rb, atol=1e-5, rtol=1e-5)

    print("KERNEL_OK")
</pallas_src>

<mosaic_0001>
module attributes {stable_mosaic.version = 11 : i64} {
  func.func @kernel(%arg0: i32, %arg1: memref<2x5x128xf32, #tpu.memory_space<vmem>>, %arg2: memref<5x5xf32, #tpu.memory_space<vmem>>, %arg3: memref<1x5xf32, #tpu.memory_space<vmem>>, %arg4: memref<5x3xf32, #tpu.memory_space<vmem>>, %arg5: memref<1x3xf32, #tpu.memory_space<vmem>>, %arg6: memref<2x3xf32, #tpu.memory_space<vmem>>, %arg7: memref<2x5xf32, #tpu.memory_space<vmem>>, %arg8: memref<2x5xf32, #tpu.memory_space<vmem>>) attributes {dimension_semantics = [#tpu.dimension_semantics<arbitrary>], iteration_bounds = array<i64: 2>, scalar_prefetch = 0 : i64, scratch_operands = 1 : i64, tpu.core_type = #tpu.core_type<tc>, window_params = [{transform_indices = @transform_0, window_bounds = array<i64: 2, 5, 128>}, {pipeline_mode = #tpu.pipeline_mode<synchronous>, transform_indices = @transform_1, window_bounds = array<i64: 5, 5>}, {pipeline_mode = #tpu.pipeline_mode<synchronous>, transform_indices = @transform_2, window_bounds = array<i64: 1, 5>}, {pipeline_mode = #tpu.pipeline_mode<synchronous>, transform_indices = @transform_3, window_bounds = array<i64: 5, 3>}, {pipeline_mode = #tpu.pipeline_mode<synchronous>, transform_indices = @transform_4, window_bounds = array<i64: 1, 3>}, {pipeline_mode = #tpu.pipeline_mode<synchronous>, transform_indices = @transform_5, window_bounds = array<i64: 2, 3>}, {pipeline_mode = #tpu.pipeline_mode<synchronous>, transform_indices = @transform_6, window_bounds = array<i64: 2, 5>}]} {
    %c0_i32 = arith.constant 0 : i32
    %0 = arith.cmpi eq, %arg0, %c0_i32 : i32
    %1 = arith.extui %0 : i1 to i32
    %c0_i32_0 = arith.constant 0 : i32
    %2 = arith.cmpi ne, %1, %c0_i32_0 : i32
    scf.if %2 {
      %cst_8 = arith.constant 0.000000e+00 : f32
      %11 = vector.broadcast %cst_8 : f32 to vector<2x5xf32>
      %c0_9 = arith.constant 0 : index
      %c0_10 = arith.constant 0 : index
      %12 = vector.load %arg8[%c0_9, %c0_10] : memref<2x5xf32, #tpu.memory_space<vmem>>, vector<2x5xf32>
      tpu.vector_store %arg8[%c0_9, %c0_10], %11 {strides = array<i32>} : memref<2x5xf32, #tpu.memory_space<vmem>>, vector<2x5xf32>,
    } else {
    }
    %c0 = arith.constant 0 : index
    %c0_1 = arith.constant 0 : index
    %c0_2 = arith.constant 0 : index
    %3 = vector.load %arg1[%c0, %c0_1, %c0_2] : memref<2x5x128xf32, #tpu.memory_space<vmem>>, vector<2x5x128xf32>
    %c0_3 = arith.constant 0 : index
    %c0_4 = arith.constant 0 : index
    %4 = vector.load %arg8[%c0_3, %c0_4] : memref<2x5xf32, #tpu.memory_space<vmem>>, vector<2x5xf32>
    %cst = arith.constant dense<0.000000e+00> : vector<2x5xf32>
    %5 = vector.multi_reduction <add>, %3, %cst [2] : vector<2x5x128xf32> to vector<2x5xf32>
    %6 = arith.addf %4, %5 : vector<2x5xf32>
    %c0_5 = arith.constant 0 : index
    %c0_6 = arith.constant 0 : index
    %7 = vector.load %arg8[%c0_5, %c0_6] : memref<2x5xf32, #tpu.memory_space<vmem>>, vector<2x5xf32>
    tpu.vector_store %arg8[%c0_5, %c0_6], %6 {strides = array<i32>} : memref<2x5xf32, #tpu.memory_space<vmem>>, vector<2x5xf32>,
    %c1_i32 = arith.constant 1 : i32
    %8 = arith.cmpi eq, %arg0, %c1_i32 : i32
    %9 = arith.extui %8 : i1 to i32
    %c0_i32_7 = arith.constant 0 : i32
    %10 = arith.cmpi ne, %9, %c0_i32_7 : i32
    scf.if %10 {
      %c0_8 = arith.constant 0 : index
      %c0_9 = arith.constant 0 : index
      %11 = vector.load %arg8[%c0_8, %c0_9] : memref<2x5xf32, #tpu.memory_space<vmem>>, vector<2x5xf32>
      %cst_10 = arith.constant 3.906250e-03 : f32
      %12 = vector.broadcast %cst_10 : f32 to vector<2x5xf32>
      %13 = arith.mulf %11, %12 : vector<2x5xf32>
      %c0_11 = arith.constant 0 : index
      %c0_12 = arith.constant 0 : index
      %14 = vector.load %arg2[%c0_11, %c0_12] : memref<5x5xf32, #tpu.memory_space<vmem>>, vector<5x5xf32>
      %cst_13 = arith.constant dense<0.000000e+00> : vector<2x5xf32>
      %15 = tpu.matmul %13, %14, %cst_13 {dimension_numbers = #tpu.dot_dimension_numbers<[1], [1], [0], [0], [0, 0, 1, 0], [], []>} : vector<2x5xf32>, vector<5x5xf32>, vector<2x5xf32> -> vector<2x5xf32>
      %c0_14 = arith.constant 0 : index
      %c0_15 = arith.constant 0 : index
      %16 = vector.load %arg3[%c0_14, %c0_15] : memref<1x5xf32, #tpu.memory_space<vmem>>, vector<1x5xf32>
      %17 = vector.broadcast %16 : vector<1x5xf32> to vector<2x5xf32>
      %18 = arith.addf %15, %17 : vector<2x5xf32>
      %c0_16 = arith.constant 0 : index
      %c0_17 = arith.constant 0 : index
      %19 = vector.load %arg7[%c0_16, %c0_17] : memref<2x5xf32, #tpu.memory_space<vmem>>, vector<2x5xf32>
      tpu.vector_store %arg7[%c0_16, %c0_17], %18 {strides = array<i32>} : memref<2x5xf32, #tpu.memory_space<vmem>>, vector<2x5xf32>,
      %c0_18 = arith.constant 0 : index
      %c0_19 = arith.constant 0 : index
      %20 = vector.load %arg4[%c0_18, %c0_19] : memref<5x3xf32, #tpu.memory_space<vmem>>, vector<5x3xf32>
      %cst_20 = arith.constant dense<0.000000e+00> : vector<2x3xf32>
      %21 = tpu.matmul %13, %20, %cst_20 {dimension_numbers = #tpu.dot_dimension_numbers<[1], [0], [0], [1], [0, 0, 1, 1], [], []>} : vector<2x5xf32>, vector<5x3xf32>, vector<2x3xf32> -> vector<2x3xf32>
      %c0_21 = arith.constant 0 : index
      %c0_22 = arith.constant 0 : index
      %22 = vector.load %arg5[%c0_21, %c0_22] : memref<1x3xf32, #tpu.memory_space<vmem>>, vector<1x3xf32>
      %23 = vector.broadcast %22 : vector<1x3xf32> to vector<2x3xf32>
      %24 = arith.addf %21, %23 : vector<2x3xf32>
      %c0_23 = arith.constant 0 : index
      %c0_24 = arith.constant 0 : index
      %25 = vector.load %arg6[%c0_23, %c0_24] : memref<2x3xf32, #tpu.memory_space<vmem>>, vector<2x3xf32>
      tpu.vector_store %arg6[%c0_23, %c0_24], %24 {strides = array<i32>} : memref<2x3xf32, #tpu.memory_space<vmem>>, vector<2x3xf32>,
    } else {
    }
    return
  }
  func.func @transform_0(%arg0: i32) -> (i32, i32, i32) {
    %c0_i32 = arith.constant 0 : i32
    %c0_i32_0 = arith.constant 0 : i32
    %c0_i32_1 = arith.constant 0 : i32
    return %c0_i32, %c0_i32_0, %arg0 : i32, i32, i32
  }
  func.func @transform_1(%arg0: i32) -> (i32, i32) {
    %c0_i32 = arith.constant 0 : i32
    %c0_i32_0 = arith.constant 0 : i32
    %c0_i32_1 = arith.constant 0 : i32
    return %c0_i32, %c0_i32_0 : i32, i32
  }
  func.func @transform_2(%arg0: i32) -> (i32, i32) {
    %c0_i32 = arith.constant 0 : i32
    %c0_i32_0 = arith.constant 0 : i32
    %c0_i32_1 = arith.constant 0 : i32
    return %c0_i32, %c0_i32_0 : i32, i32
  }
  func.func @transform_3(%arg0: i32) -> (i32, i32) {
    %c0_i32 = arith.constant 0 : i32
    %c0_i32_0 = arith.constant 0 : i32
    %c0_i32_1 = arith.constant 0 : i32
    return %c0_i32, %c0_i32_0 : i32, i32
  }
  func.func @transform_4(%arg0: i32) -> (i32, i32) {
    %c0_i32 = arith.constant 0 : i32
    %c0_i32_0 = arith.constant 0 : i32
    %c0_i32_1 = arith.constant 0 : i32
    return %c0_i32, %c0_i32_0 : i32, i32
  }
  func.func @transform_5(%arg0: i32) -> (i32, i32) {
    %c0_i32 = arith.constant 0 : i32
    %c0_i32_0 = arith.constant 0 : i32
    %c0_i32_1 = arith.constant 0 : i32
    return %c0_i32, %c0_i32_0 : i32, i32
  }
  func.func @transform_6(%arg0: i32) -> (i32, i32) {
    %c0_i32 = arith.constant 0 : i32
    %c0_i32_0 = arith.constant 0 : i32
    %c0_i32_1 = arith.constant 0 : i32
    return %c0_i32, %c0_i32_0 : i32, i32
  }
}

</mosaic_0001>

<bundles_post_ra>
// kernel: tpu_custom_call.1
= control target key start
LH: loop header
LB: loop body
LE: loop exit
PB: predicated region body
PF: predicated region fallthrough
CT: control target
= control target key end

     0   :  { %12 = vsyncpa [#allocation5], 0  ;;  %s861_s0 = inlined_call_operand.vmem [shape: f32[2,5,256], index: 0, kind: input, shape index: {}]   ;;  %s862_s1 = inlined_call_operand.vmem [shape: f32[5,5], index: 1, kind: input, shape index: {}]   ;;  %s863_s2 = inlined_call_operand.vmem [shape: f32[1,5], index: 2, kind: input, shape index: {}]   ;;  %s864_s3 = inlined_call_operand.vmem [shape: f32[5,3], index: 3, kind: input, shape index: {}]   ;;  %s865_s4 = inlined_call_operand.vmem [shape: f32[1,3], index: 4, kind: input, shape index: {}]   ;;  %s866_s5 = inlined_call_operand.hbm [shape: f32[2,3], index: 5, kind: output, shape index: {0}]   ;;  %s867_s6 = inlined_call_operand.hbm [shape: f32[2,5], index: 6, kind: output, shape index: {1}]  }
   0x1   :  { %13 = vsyncpa [#allocation7], 0  ;;  %s758_s21 = smov 0   ;;  %s760_s22 = smov 0  }
   0x2   :  { %s762_s23 = smov 0  }
   0x3 LB: > { %s771_s24 = sadd.s32 4294967295, %s716_s23   ;;  %s773_s25 = sadd.s32 1, %s716_s23   ;;  %s716_s23 = sphi %s762_s23, %s870_s23   ;;  %s712_s22 = sphi %s760_s22, %s869_s22   ;;  %s708_s21 = sphi %s758_s21, %s868_s21  }
   0x4   : > { %s23_s26 = ssub.s32 %s716_s23, %s773_s25  ;;  %s26_s27 = sadd.s32 1, %s712_s22 }
   0x5   : > { %p24_p0 = scmp.eq.s32.totalorder %s23_s26, 0  ;;  %p33_p1 = scmp.ne.s32.totalorder %s712_s22, %s708_s21 }
   0x6   : > { %p34_p2 = scmp.eq.s32.totalorder %s716_s23, 0  ;;  %p560_p4 = scmp.ge.s32.totalorder %s716_s23, 2 }
   0x7   : > { %s780_s28 = scalar_select %p24_p0, %s712_s22, %s26_s27  }
   0x8   : > { %p35_p3 = por %p34_p2, %p33_p1  ;;  %197 = sbr.rel (%p560_p4) target bundleno = 22 (0x16), region = 32 }
   0xf   : > { %200 = sbr.rel (!%p35_p3) target bundleno = 22 (0x16), region = 36  ;;  %s202_s29 = sand.u32 (%p35_p3), 1, %s712_s22  }
  0x10   : > { %s562_s30 = sshll.u32 (%p35_p3), %s716_s23, 3  ;;  %s561_s7 = sshll.u32 (%p35_p3), %s202_s29, 4 }
  0x11   : > { %s206_s10 = scalar_lea.vmem (%p35_p3), %s861_s0, %s562_s30  ;;  %s204_s11 = scalar_lea.vmem (%p35_p3), [#allocation3], %s561_s7 }
  0x12   : > { %v236_v0 = vld [vmem:[%s206_s10] sm:$0xff] (%p35_p3)  ;;  %v238_v1 = vld [vmem:[%s206_s10 + $0x10] sm:$0xff] (%p35_p3) }
  0x13   : > { %237 = vst [vmem:[%s204_s11] sm:$0xff] (%p35_p3), %v236_v0  ;;  %239 = vst [vmem:[%s204_s11 + $0x8] sm:$0xff] (%p35_p3), %v238_v1 }
  0x16 PF: > { %p563_p5 = scmp.ge.s32.totalorder %s716_s23, 1  ;;  %p244_p6 = scmp.lt.s32.totalorder %s716_s23, 3 }
  0x18   : > { %p245_p7 = pnand %p563_p5, %p244_p6 }
  0x19   : > { %s251_s12 = sand.u32 (!%p245_p7), 1, %s708_s21   ;;  %p565_p8 = scmp.ne.s32.totalorder (!%p245_p7), %s771_s24, 0 }
  0x1a   : > { %248 = sbr.rel (%p245_p7) target bundleno = 467 (0x1d3), region = 74  ;;  %s564_s13 = sshll.u32 (!%p245_p7), %s251_s12, 4 }
  0x1b   : > { %s253_s14 = scalar_lea.vmem (!%p245_p7), [#allocation3], %s564_s13 }
  0x21   : > { %278 = sbr.rel (%p565_p8) target bundleno = 40 (0x28), region = 82  ;;  %vm279_vm0 = vcmask (!%p565_p8), 33792   ;;  %v718_v2 = vmov (!%p565_p8), 0.0  }
  0x22   : > { %280 = vst.msk [vmem:[#allocation2] sm:$0x3] (!%p565_p8), %vm279_vm0, %v718_v2 }
  0x28 PF: > { %v281_v3 = vld [vmem:[%s253_s14] sm:$0x1f]  ;;  %vm284_vm1 = vcmask 1044480   ;;  %v282_v4 = vld [vmem:[%s253_s14 + $0x8] sm:$0x1f]  ;;  %v293_v7 = vlaneseq  ;;  %vm303_vm2 = vcmask 1041409  }
  0x29   : > { %v285_v5 = vsel %vm284_vm1, %v281_v3, 0.0  ;;  %v288_v6 = vsel %vm284_vm1, %v282_v4, 0.0  ;;  %v283_v14 = vld [vmem:[#allocation2] sm:$0x3]  ;;  %vm307_vm3 = vcmask 33792   ;;  %p566_p9 = scmp.ne.s32.totalorder %s771_s24, 1 }
  0x2a   : > { %286 = vadd.xlane.f32.xlu0 %v285_v5  ;;  %v294_v8 = vand.u32 127, %v293_v7  ;;  %v296_v9 = vshrl.u32 %v293_v7, 7  ;;  %v315_v18 = vld [vmem:[%s862_s1] sm:$0x1f] (!%p566_p9)  ;;  %vm323_vm4 = vcmask (!%p566_p9), 39936   ;;  %v719_v20 = vmov (!%p566_p9), 0.0  }
  0x2b   : > { %v401_v19 = vld [vmem:[%s864_s3] sm:$0x1f] (!%p566_p9)  ;;  %583 = vmatprep.subr.mxu0 (!%p566_p9), %v719_v20  ;;  %588 = vmatprep.subr.mxu1 (!%p566_p9), %v719_v20  ;;  %vm720_vm5 = vmmov (!%p566_p9), 0   ;;  %vm482_vm6 = vcmask (!%p566_p9), 17408  }
  0x2c   : > { %v297_v11 = vsub.s32 %v294_v8, %v296_v9  ;;  %584 = vmatpush3.xpose.msk.msra.mxu0 (!%p566_p9), %vm323_vm4, %v315_v18  ;;  %589 = vmatpush3.msk.msra.mxu1 (!%p566_p9), %vm284_vm1, %v401_v19  ;;  %v570_v23 = vld [vmem:[%s865_s4] ss:$0 sm:$0xff] (!%p566_p9) }
  0x2d   : > { %590 = vmatprep.mubr.msk.f32.mxu1 (!%p566_p9), %vm720_vm5, %v719_v20  ;;  %585 = vmatprep.mubr.msk.f32.mxu0 (!%p566_p9), %vm720_vm5, %v719_v20  ;;  %v567_v24 = vld [vmem:[%s863_s2] ss:$0 sm:$0xff] (!%p566_p9) }
  0x2e   : > { %289 = vadd.xlane.f32.xlu0 %v288_v6 }
  0xb7   : > { %v287_v10 = vpop.xlane.xlu0 %286 }
  0xb8   : > { %v298_v13 = vrot.slane %v287_v10, %v297_v11 }
  0xbb   : > { %v290_v12 = vpop.xlane.xlu0 %289  ;;  %312 = sbr.rel (%p566_p9) target bundleno = 419 (0x1a3), region = 86 }
  0xbc   : > { %v302_v15 = vrot.slane %v290_v12, %v297_v11 }
  0xbe   : > { %v304_v16 = vsel %vm303_vm2, %v302_v15, %v298_v13 }
  0xbf   : > { %v306_v17 = vadd.f32 %v304_v16, %v283_v14 }
  0xc1   : > { %308 = vst.msk [vmem:[#allocation2] sm:$0x3] %vm307_vm3, %v306_v17 }
  0xc8   : > { %v313_v21 = vld [vmem:[#allocation2] sm:$0x3] }
  0xc9   : > { %v314_v22 = vmul.f32 0.00390625, %v313_v21 }
  0xcb   : > { %591 = vmatmul.mubr.msk.f32.vlgmr.msra.gmra.mrb[0].mxu1 %vm323_vm4, %v314_v22  ;;  %586 = vmatmul.mubr.msk.f32.vlgmr.msra.gmra.mrb[0].mxu0 %vm323_vm4, %v314_v22 }
 0x19e   : > { %v478_v25 = vpop.f32.mrb[0].mxu1  ;;  %v396_v27 = vpop.f32.mrb[0].mxu0 }
 0x19f   : > { %v479_v26 = vadd.f32 %v570_v23, %v478_v25  ;;  %v592_v28 = vpop.f32.mrb[1].mxu1  ;;  %v397_v29 = vadd.f32 %v567_v24, %v396_v27  ;;  %v587_v30 = vpop.f32.mrb[1].mxu0 }
 0x1a1   : > { %483 = vst.msk [vmem:[#allocation4] sm:$0x3] %vm482_vm6, %v479_v26 }
 0x1a2   : > { %400 = vst.msk [vmem:[#allocation6] sm:$0x3] %vm307_vm3, %v397_v29 }
 0x1a3 PF: > { %p601_p10 = scmp.eq.s32.totalorder %s771_s24, 1  ;;  %s721_s26 = smov [#allocation4]  }
 0x1a4   : > { %s491_s27 = sshll.u32 %s721_s26, 4  ;;  %s722_s29 = smov [#allocation6]   ;;  %s492_s27 = int_to_ptr.vmem [resolvable:$true] %s491_s27 }
 0x1a5   : > { %s502_s30 = sshll.u32 %s722_s29, 4  ;;  %s634_s7 = scalar_lea.vmem %s492_s27, 32  ;;  %s503_s30 = int_to_ptr.vmem [resolvable:$true] %s502_s30 }
 0x1a6   : > { %p635_p11 = scmp.ne.s32.totalorder %s492_s27, %s634_s7  ;;  %p641_p0 = scmp.lt.s32.totalorder %s492_s27, %s492_s27 }
 0x1a7   : > { %p642_p1 = scmp.lt.s32.totalorder %s634_s7, %s634_s7 }
 0x1a8   : > { %p636_p12 = pnand %p635_p11, %p601_p10 }
 0x1a9   : > { %p643_p2 = por %p642_p1, %p641_p0 }
 0x1aa   : > { %p637_p13 = pneg %p636_p12 }
 0x1ac   : > { %p644_p3 = pnand %p643_p2, %p637_p13 }
 0x1ae   : > { %647 = shalt.err (!%p644_p3)
}
 0x1af   : > { %s648_s10 = scalar_lea.hbm %s866_s5, 32 }
 0x1b0   : > { %p649_p4 = scmp.ne.s32.totalorder %s866_s5, %s648_s10  ;;  %p654_p7 = scmp.lt.u32.totalorder %s648_s10, %s866_s5 }
 0x1b2   : > { %p650_p5 = pnand %p649_p4, %p601_p10 }
 0x1b4   : > { %p651_p6 = pneg %p650_p5 }
 0x1b6   : > { %p656_p8 = pnand %p654_p7, %p651_p6 }
 0x1b8   : > { %659 = shalt.err (!%p656_p8)
}
 0x1b9   : > { %594 = dma.vmem_to_hbm [thread:$0]  (%p601_p10), %s492_s27, 32, %s866_s5, [#allocation5]  }
 0x1ba   : > { %s660_s17 = scalar_lea.vmem %s503_s30, 32  ;;  %p667_p13 = scmp.lt.s32.totalorder %s503_s30, %s503_s30 }
 0x1bb   : > { %p661_p9 = scmp.ne.s32.totalorder %s503_s30, %s660_s17  ;;  %p668_p0 = scmp.lt.s32.totalorder %s660_s17, %s660_s17 }
 0x1bd   : > { %p662_p11 = pnand %p661_p9, %p601_p10  ;;  %p669_p1 = por %p668_p0, %p667_p13 }
 0x1bf   : > { %p663_p12 = pneg %p662_p11 }
 0x1c1   : > { %p670_p2 = pnand %p669_p1, %p663_p12 }
 0x1c3   : > { %673 = shalt.err (!%p670_p2)
}
 0x1c4   : > { %s674_s20 = scalar_lea.hbm %s867_s6, 32 }
 0x1c5   : > { %p675_p3 = scmp.ne.s32.totalorder %s867_s6, %s674_s20  ;;  %p680_p6 = scmp.lt.u32.totalorder %s674_s20, %s867_s6 }
 0x1c7   : > { %p676_p4 = pnand %p675_p3, %p601_p10 }
 0x1c9   : > { %p677_p5 = pneg %p676_p4 }
 0x1cb   : > { %p682_p7 = pnand %p680_p6, %p677_p5 }
 0x1cd   : > { %685 = shalt.err (!%p682_p7)
}
 0x1ce   : > { %596 = dma.vmem_to_hbm [thread:$0]  (%p601_p10), %s503_s30, 32, %s867_s6, [#allocation7]  }
 0x1cf   : > { %699 = dma.done.wait (%p601_p10), [#allocation5], 32  }
 0x1d0   : > { %701 = vsyncadd (%p601_p10), [#allocation5], 4294967264 }
 0x1d1   : > { %703 = dma.done.wait (%p601_p10), [#allocation7], 32  }
 0x1d2   : > { %705 = vsyncadd (%p601_p10), [#allocation7], 4294967264 }
 0x1d3 PF: > { %p16_p8 = scmp.ge.s32.totalorder %s773_s25, 4   ;;  %s868_s21 = smov %s712_s22 }
 0x1d4   : > { %s869_s22 = smov %s780_s28  ;;  %s870_s23 = smov %s773_s25 }
 0x1d5   :  { %18 = sbr.rel (!%p16_p8) target bundleno = 3 (0x3), region = 126 }
 0x1dc   :  { %519 = vsyncpa [#allocation5], 1 }
 0x1dd   :  { %521 = vsyncpa [#allocation5 + $0x1], 1 }
 0x1de   :  { %522 = vsyncpa [#allocation7], 1 }

</bundles_post_ra>
